<compile_context>
chip_gen: v7x
topology: tpu7x:2x2x1
jax: 0.10.0
libtpu: 0.0.40
codegen_flags: <defaults>
</compile_context>

<pallas_src>
import functools

import jax
import jax.numpy as jnp
from jax import lax
from jax.experimental import pallas as pl
from jax.experimental.pallas import tpu as pltpu


def _prenorm1d_kernel(x_ref, w_ref, b_ref, o_ref, *, use_mxu):
    # x_ref: (1, C, TL)   w_ref: (C, C)  [g * sqrt(C) pre-folded into columns]
    # b_ref: (C, 1)       o_ref: (1, C, TL)
    x = x_ref[0].astype(jnp.float32)                        # (C, TL)
    C = x.shape[0]

    # F.normalize(x, dim=1): x / max(||x||_2, 1e-12) per (batch, length) position.
    ss = jnp.sum(x * x, axis=0, keepdims=True)              # (1, TL)
    inv = lax.rsqrt(jnp.maximum(ss, 1e-24))                 # EUP; == 1/max(sqrt(ss), 1e-12)
    y = x * inv                                             # (C, TL); g*sqrt(C) is in W

    bias = b_ref[...].astype(jnp.float32)                   # (C, 1)
    if use_mxu:
        # bf16 operands + fp32 accumulate: MXU fast path (v6e / v7x).
        out = jnp.dot(w_ref[...], y.astype(jnp.bfloat16),
                      preferred_element_type=jnp.float32)   # (C, TL)
    else:
        # Tiny C: do the channel mix on the VPU (an 8x8 weight uses <0.5% of an
        # MXU tile and forces padded layouts); kernel is HBM-bandwidth bound here.
        w = w_ref[...].astype(jnp.float32)                  # (C, C)
        out = w[:, 0:1] * y[0:1, :]
        for c in range(1, C):
            out = out + w[:, c:c + 1] * y[c:c + 1, :]
    o_ref[0] = (out + bias).astype(o_ref.dtype)


def _pick_tile(C, L, elem_bytes, block_budget_bytes=32 << 20):
    """Largest lane-dense (multiple-of-128) L tile whose double-buffered in+out
    blocks stay inside a conservative cross-generation VMEM budget (v7x has only
    64 MiB per TensorCore, so budget ~= half of what v5e/v6e could take)."""
    if L % 128 != 0:
        return L                                   # block == full array dim is legal
    max_tl = block_budget_bytes // (4 * C * elem_bytes)   # 2 in + 2 out buffers
    max_tl = max(128, (max_tl // 128) * 128)
    return int(min(L, max_tl, 2048))


def prenorm1d(x, g, w, b, *, tl=None):
    """x: (B, C, L); g: (1, C, 1) RMSNorm gain; w: (C, C) Conv1d(k=1) weight; b: (C, 1)."""
    B, C, L = x.shape
    elem = jnp.dtype(x.dtype).itemsize
    if tl is None:
        tl = _pick_tile(C, L, elem)
    n_l = pl.cdiv(L, tl)

    # Fold g * sqrt(C) into the weight columns once (O(C^2) wrapper op on a small
    # weight) so the hot (C, TL) path only does x * rsqrt(sum x^2).
    w_scaled = (w * (g.reshape(1, C) * (float(C) ** 0.5))).astype(jnp.float32)
    use_mxu = C > 32
    if use_mxu:
        w_scaled = w_scaled.astype(jnp.bfloat16)   # halve weight VMEM, MXU-native
    b2 = b.reshape(C, 1).astype(jnp.float32)

    # Explicit scoped-VMEM limit: 2x double-buffered in + out blocks, resident
    # weights, plus headroom; capped at v7x's 64 MiB physical VMEM.
    block_bytes = C * tl * elem
    weight_bytes = C * C * jnp.dtype(w_scaled.dtype).itemsize + C * 4
    vmem_limit = int(min(max(4 * block_bytes + 2 * weight_bytes + (4 << 20), 16 << 20),
                         64 << 20))

    kernel = functools.partial(_prenorm1d_kernel, use_mxu=use_mxu)
    return pl.pallas_call(
        kernel,
        out_shape=jax.ShapeDtypeStruct((B, C, L), x.dtype),
        grid_spec=pltpu.PrefetchScalarGridSpec(
            num_scalar_prefetch=0,
            grid=(B, n_l),
            in_specs=[
                pl.BlockSpec((1, C, tl), lambda bi, li: (bi, 0, li)),
                pl.BlockSpec((C, C), lambda bi, li: (0, 0)),   # stays resident
                pl.BlockSpec((C, 1), lambda bi, li: (0, 0)),   # stays resident
            ],
            out_specs=pl.BlockSpec((1, C, tl), lambda bi, li: (bi, 0, li)),
        ),
        compiler_params=pltpu.CompilerParams(
            dimension_semantics=("parallel", "parallel"),
            vmem_limit_bytes=vmem_limit),
    )(x, w_scaled, b2)


def prenorm1d_ref(x, g, w, b):
    """Pure-JAX reference mirroring the PyTorch module semantics."""
    C = x.shape[1]
    denom = jnp.maximum(jnp.sqrt(jnp.sum(x * x, axis=1, keepdims=True)), 1e-12)
    y = x / denom * g * (float(C) ** 0.5)
    out = jnp.einsum("oc,bcl->bol", w, y) + b[None, :, :]
    return out


if __name__ == "__main__":
    key = jax.random.PRNGKey(0)
    B, C, L = 2, 8, 512

    kx, kg, kw, kb = jax.random.split(key, 4)
    x = jax.random.normal(kx, (B, C, L), dtype=jnp.float32)

    # Parameters (deterministic, synthetic); non-trivial g to exercise the folding.
    g = 1.0 + 0.1 * jax.random.normal(kg, (1, C, 1), dtype=jnp.float32)   # RMSNorm.g
    w = jax.random.normal(kw, (C, C), dtype=jnp.float32) * 0.1            # Conv1d(k=1) weight
    b = jax.random.normal(kb, (C, 1), dtype=jnp.float32) * 0.1            # Conv1d bias

    # tl=128 -> grid (2, 4): exercises L tiling + lane-dense 128-multiple stores.
    out = jax.block_until_ready(prenorm1d(x, g, w, b, tl=128))

    ref = prenorm1d_ref(x, g, w, b)
    assert out.shape == (B, C, L)
    assert jnp.allclose(out, ref, atol=1e-4, rtol=1e-4), "mismatch vs reference"

    # TODO(synk): PreNorm1d wraps an arbitrary `fn`; only a pointwise
    # Conv1d(dim, dim, 1) is fused here — other fn choices need their own fusion.
    print("KERNEL_OK")
</pallas_src>

<mosaic_0001>
module attributes {stable_mosaic.version = 11 : i64} {
  func.func @_prenorm1d_kernel(%arg0: i32, %arg1: i32, %arg2: memref<1x8x128xf32, #tpu.memory_space<vmem>>, %arg3: memref<8x8xf32, #tpu.memory_space<vmem>>, %arg4: memref<8x1xf32, #tpu.memory_space<vmem>>, %arg5: memref<1x8x128xf32, #tpu.memory_space<vmem>>) attributes {dimension_semantics = [#tpu.dimension_semantics<parallel>, #tpu.dimension_semantics<parallel>], iteration_bounds = array<i64: 2, 4>, scalar_prefetch = 0 : i64, scratch_operands = 0 : i64, tpu.core_type = #tpu.core_type<tc>, window_params = [{transform_indices = @transform_0, window_bounds = array<i64: 1, 8, 128>}, {pipeline_mode = #tpu.pipeline_mode<synchronous>, transform_indices = @transform_1, window_bounds = array<i64: 8, 8>}, {pipeline_mode = #tpu.pipeline_mode<synchronous>, transform_indices = @transform_2, window_bounds = array<i64: 8, 1>}, {transform_indices = @transform_3, window_bounds = array<i64: 1, 8, 128>}]} {
    %c0 = arith.constant 0 : index
    %c0_0 = arith.constant 0 : index
    %c0_1 = arith.constant 0 : index
    %0 = vector.load %arg2[%c0, %c0_0, %c0_1] : memref<1x8x128xf32, #tpu.memory_space<vmem>>, vector<1x8x128xf32>
    %1 = vector.shape_cast %0 : vector<1x8x128xf32> to vector<8x128xf32>
    %2 = arith.mulf %1, %1 : vector<8x128xf32>
    %cst = arith.constant dense<0.000000e+00> : vector<128xf32>
    %3 = vector.multi_reduction <add>, %2, %cst [0] : vector<8x128xf32> to vector<128xf32>
    %4 = vector.shape_cast %3 : vector<128xf32> to vector<1x128xf32>
    %cst_2 = arith.constant 1.000000e-24 : f32
    %5 = vector.broadcast %cst_2 : f32 to vector<1x128xf32>
    %6 = arith.maximumf %4, %5 : vector<1x128xf32>
    %7 = math.rsqrt %6 : vector<1x128xf32>
    %8 = vector.broadcast %7 : vector<1x128xf32> to vector<8x128xf32>
    %9 = arith.mulf %1, %8 : vector<8x128xf32>
    %c0_3 = arith.constant 0 : index
    %c0_4 = arith.constant 0 : index
    %10 = vector.load %arg4[%c0_3, %c0_4] : memref<8x1xf32, #tpu.memory_space<vmem>>, vector<8x1xf32>
    %c0_5 = arith.constant 0 : index
    %c0_6 = arith.constant 0 : index
    %11 = vector.load %arg3[%c0_5, %c0_6] : memref<8x8xf32, #tpu.memory_space<vmem>>, vector<8x8xf32>
    %12 = vector.extract_strided_slice %11 {offsets = [0, 0], sizes = [8, 1], strides = [1, 1]} : vector<8x8xf32> to vector<8x1xf32>
    %13 = vector.extract_strided_slice %9 {offsets = [0, 0], sizes = [1, 128], strides = [1, 1]} : vector<8x128xf32> to vector<1x128xf32>
    %14 = vector.broadcast %12 : vector<8x1xf32> to vector<8x128xf32>
    %15 = vector.broadcast %13 : vector<1x128xf32> to vector<8x128xf32>
    %16 = arith.mulf %14, %15 : vector<8x128xf32>
    %17 = vector.extract_strided_slice %11 {offsets = [0, 1], sizes = [8, 1], strides = [1, 1]} : vector<8x8xf32> to vector<8x1xf32>
    %18 = vector.extract_strided_slice %9 {offsets = [1, 0], sizes = [1, 128], strides = [1, 1]} : vector<8x128xf32> to vector<1x128xf32>
    %19 = vector.broadcast %17 : vector<8x1xf32> to vector<8x128xf32>
    %20 = vector.broadcast %18 : vector<1x128xf32> to vector<8x128xf32>
    %21 = arith.mulf %19, %20 : vector<8x128xf32>
    %22 = arith.addf %16, %21 : vector<8x128xf32>
    %23 = vector.extract_strided_slice %11 {offsets = [0, 2], sizes = [8, 1], strides = [1, 1]} : vector<8x8xf32> to vector<8x1xf32>
    %24 = vector.extract_strided_slice %9 {offsets = [2, 0], sizes = [1, 128], strides = [1, 1]} : vector<8x128xf32> to vector<1x128xf32>
    %25 = vector.broadcast %23 : vector<8x1xf32> to vector<8x128xf32>
    %26 = vector.broadcast %24 : vector<1x128xf32> to vector<8x128xf32>
    %27 = arith.mulf %25, %26 : vector<8x128xf32>
    %28 = arith.addf %22, %27 : vector<8x128xf32>
    %29 = vector.extract_strided_slice %11 {offsets = [0, 3], sizes = [8, 1], strides = [1, 1]} : vector<8x8xf32> to vector<8x1xf32>
    %30 = vector.extract_strided_slice %9 {offsets = [3, 0], sizes = [1, 128], strides = [1, 1]} : vector<8x128xf32> to vector<1x128xf32>
    %31 = vector.broadcast %29 : vector<8x1xf32> to vector<8x128xf32>
    %32 = vector.broadcast %30 : vector<1x128xf32> to vector<8x128xf32>
    %33 = arith.mulf %31, %32 : vector<8x128xf32>
    %34 = arith.addf %28, %33 : vector<8x128xf32>
    %35 = vector.extract_strided_slice %11 {offsets = [0, 4], sizes = [8, 1], strides = [1, 1]} : vector<8x8xf32> to vector<8x1xf32>
    %36 = vector.extract_strided_slice %9 {offsets = [4, 0], sizes = [1, 128], strides = [1, 1]} : vector<8x128xf32> to vector<1x128xf32>
    %37 = vector.broadcast %35 : vector<8x1xf32> to vector<8x128xf32>
    %38 = vector.broadcast %36 : vector<1x128xf32> to vector<8x128xf32>
    %39 = arith.mulf %37, %38 : vector<8x128xf32>
    %40 = arith.addf %34, %39 : vector<8x128xf32>
    %41 = vector.extract_strided_slice %11 {offsets = [0, 5], sizes = [8, 1], strides = [1, 1]} : vector<8x8xf32> to vector<8x1xf32>
    %42 = vector.extract_strided_slice %9 {offsets = [5, 0], sizes = [1, 128], strides = [1, 1]} : vector<8x128xf32> to vector<1x128xf32>
    %43 = vector.broadcast %41 : vector<8x1xf32> to vector<8x128xf32>
    %44 = vector.broadcast %42 : vector<1x128xf32> to vector<8x128xf32>
    %45 = arith.mulf %43, %44 : vector<8x128xf32>
    %46 = arith.addf %40, %45 : vector<8x128xf32>
    %47 = vector.extract_strided_slice %11 {offsets = [0, 6], sizes = [8, 1], strides = [1, 1]} : vector<8x8xf32> to vector<8x1xf32>
    %48 = vector.extract_strided_slice %9 {offsets = [6, 0], sizes = [1, 128], strides = [1, 1]} : vector<8x128xf32> to vector<1x128xf32>
    %49 = vector.broadcast %47 : vector<8x1xf32> to vector<8x128xf32>
    %50 = vector.broadcast %48 : vector<1x128xf32> to vector<8x128xf32>
    %51 = arith.mulf %49, %50 : vector<8x128xf32>
    %52 = arith.addf %46, %51 : vector<8x128xf32>
    %53 = vector.extract_strided_slice %11 {offsets = [0, 7], sizes = [8, 1], strides = [1, 1]} : vector<8x8xf32> to vector<8x1xf32>
    %54 = vector.extract_strided_slice %9 {offsets = [7, 0], sizes = [1, 128], strides = [1, 1]} : vector<8x128xf32> to vector<1x128xf32>
    %55 = vector.broadcast %53 : vector<8x1xf32> to vector<8x128xf32>
    %56 = vector.broadcast %54 : vector<1x128xf32> to vector<8x128xf32>
    %57 = arith.mulf %55, %56 : vector<8x128xf32>
    %58 = arith.addf %52, %57 : vector<8x128xf32>
    %59 = vector.broadcast %10 : vector<8x1xf32> to vector<8x128xf32>
    %60 = arith.addf %58, %59 : vector<8x128xf32>
    %c0_7 = arith.constant 0 : index
    %c0_8 = arith.constant 0 : index
    %c0_9 = arith.constant 0 : index
    %61 = vector.load %arg5[%c0_7, %c0_8, %c0_9] : memref<1x8x128xf32, #tpu.memory_space<vmem>>, vector<1x8x128xf32>
    %62 = vector.shape_cast %61 : vector<1x8x128xf32> to vector<8x128xf32>
    %63 = vector.shape_cast %60 : vector<8x128xf32> to vector<1x8x128xf32>
    tpu.vector_store %arg5[%c0_7, %c0_8, %c0_9], %63 {strides = array<i32>} : memref<1x8x128xf32, #tpu.memory_space<vmem>>, vector<1x8x128xf32>,
    return
  }
  func.func @transform_0(%arg0: i32, %arg1: i32) -> (i32, i32, i32) {
    %c0_i32 = arith.constant 0 : i32
    %c0_i32_0 = arith.constant 0 : i32
    return %arg0, %c0_i32, %arg1 : i32, i32, i32
  }
  func.func @transform_1(%arg0: i32, %arg1: i32) -> (i32, i32) {
    %c0_i32 = arith.constant 0 : i32
    %c0_i32_0 = arith.constant 0 : i32
    %c0_i32_1 = arith.constant 0 : i32
    return %c0_i32, %c0_i32_0 : i32, i32
  }
  func.func @transform_2(%arg0: i32, %arg1: i32) -> (i32, i32) {
    %c0_i32 = arith.constant 0 : i32
    %c0_i32_0 = arith.constant 0 : i32
    %c0_i32_1 = arith.constant 0 : i32
    return %c0_i32, %c0_i32_0 : i32, i32
  }
  func.func @transform_3(%arg0: i32, %arg1: i32) -> (i32, i32, i32) {
    %c0_i32 = arith.constant 0 : i32
    %c0_i32_0 = arith.constant 0 : i32
    return %arg0, %c0_i32, %arg1 : i32, i32, i32
  }
}

</mosaic_0001>

<bundles_post_ra>
// kernel: tpu_custom_call.1
= control target key start
LH: loop header
LB: loop body
LE: loop exit
PB: predicated region body
PF: predicated region fallthrough
CT: control target
= control target key end

     0   :  { %8 = vsyncpa [#allocation3], 0  ;;  %s884_s0 = inlined_call_operand.hbm [shape: f32[2,8,512], index: 0, kind: input, shape index: {}]   ;;  %s885_s1 = inlined_call_operand.vmem [shape: f32[8,8], index: 1, kind: input, shape index: {}]   ;;  %s886_s2 = inlined_call_operand.vmem [shape: f32[8,1], index: 2, kind: input, shape index: {}]   ;;  %s887_s3 = inlined_call_operand.hbm [shape: f32[2,8,512], index: 3, kind: output, shape index: {}]  }
   0x1   :  { %10 = vsyncpa [#allocation3 + $0x1], 0 }
   0x2   :  { %11 = vsyncpa [#allocation4], 0 }
   0x3   :  { %13 = vsyncpa [#allocation4 + $0x1], 0  ;;  %s677_s12 = smov 0   ;;  %s679_s13 = smov 0  }
   0x4   :  { %s681_s14 = smov 0   ;;  %s683_s15 = smov 0  }
   0x5   :  { %s685_s16 = smov 0   ;;  %s687_s17 = smov 0  }
   0x6   :  { %s689_s18 = smov 0   ;;  %s691_s19 = smov 0  }
   0x7 LB: > { %s405_s20 = sadd.s32 4294967295, %s645_s19   ;;  %s406_s21 = sadd.s32 4294967294, %s645_s19   ;;  %s645_s19 = sphi %s691_s19, %s19_s19   ;;  %s641_s18 = sphi %s689_s18, %s904_s18   ;;  %s637_s17 = sphi %s687_s17, %s903_s17   ;;  %s633_s16 = sphi %s685_s16, %s902_s16   ;;  %s629_s15 = sphi %s683_s15, %s901_s15   ;;  %s625_s14 = sphi %s681_s14, %s900_s14   ;;  %s621_s13 = sphi %s679_s13, %s899_s13   ;;  %s617_s12 = sphi %s677_s12, %s898_s12  }
   0x8   : > { %s28_s22 = sadd.s32 1, %s637_s17  ;;  %s31_s23 = sadd.s32 1, %s641_s18 }
   0x9   : > { %p29_p0 = scmp.ge.s32.totalorder %s28_s22, 4  ;;  %s40_s24 = sadd.s32 1, %s625_s14 }
   0xa   : > { %p47_p1 = scmp.ne.s32.totalorder %s625_s14, %s621_s13  ;;  %p48_p2 = scmp.eq.s32.totalorder %s645_s19, 0 }
   0xb   : > { %s906_s22 = smov (%p29_p0, %s28_s22), 0  ;;  %s908_s23 = smov (!%p29_p0, %s31_s23), %s641_s18 }
   0xc   : > { %s36_s25 = ssub.s32 %s637_s17, %s906_s22  ;;  %p730_p3 = por %p48_p2, %p47_p1 }
   0xd   : > { %p33_p4 = scmp.ge.s32.totalorder %s908_s23, 2  ;;  %p53_p5 = scmp.ne.s32.totalorder %s621_s13, %s617_s12 }
   0xe   : > { %p54_p6 = scmp.eq.s32.totalorder %s405_s20, 0  ;;  %p121_p7 = scmp.eq.s32.totalorder %s405_s20, 7 }
   0xf   : > { %s910_s23 = smov (%p33_p4, %s908_s23), 0  ;;  %p127_p10 = scmp.eq.s32.totalorder %s406_s21, 7 }
  0x10   : > { %p738_p8 = por %p54_p6, %p53_p5  ;;  %p742_p9 = por %p121_p7, %p47_p1 }
  0x11   : > { %s35_s29 = ssub.s32 %s641_s18, %s910_s23  ;;  %p748_p12 = por %p127_p10, %p53_p5 }
  0x12   : > { %s891_s28 = scalar_select %p742_p9, 1, 0 }
  0x13   : > { %s37_s30 = sor.u32 %s36_s25, %s35_s29  ;;  %p432_p13 = scmp.lt.s32.totalorder %s645_s19, 8 }
  0x14   : > { %p38_p11 = scmp.eq.s32.totalorder %s37_s30, 0  ;;  %s153_s5 = sand.u32 1, %s625_s14  }
  0x15   : > { %s892_s4 = scalar_select %p748_p12, 1, 0 }
  0x16   : > { %s755_s6 = scalar_select %p38_p11, %s625_s14, %s40_s24  }
  0x17   : > { %s409_s7 = sshll.u32 %s153_s5, 3  ;;  %s410_s8 = sshll.u32 %s641_s18, 2 }
  0x18   : > { %s162_s9 = sadd.s32 %s637_s17, %s410_s8  ;;  %s157_s10 = scalar_lea.vmem [#allocation2], %s409_s7 }
  0x19   : > { %s166_s11 = sshll.u32 %s157_s10, 4  ;;  %s411_s20 = sshll.u32 %s162_s9, 7  ;;  %s759_s11 = int_to_ptr.vmem [resolvable:$true] %s166_s11 }
  0x1a   : > { %s764_s29 = scalar_lea.hbm %s884_s0, %s411_s20  ;;  %p768_p0 = pnand %p432_p13, %p730_p3 }
  0x1b   : > { %s154_s30 = scalar_lea.sflag [#allocation3], %s153_s5  ;;  %s517_s7 = scalar_lea.hbm %s764_s29, 128 }
  0x1c   : > { %p518_p4 = scmp.ne.s32.totalorder %s764_s29, %s517_s7  ;;  %p519_p5 = pneg %p768_p0 }
  0x1d   : > { %s522_s9 = scalar_lea.hbm %s884_s0, 1024  ;;  %p523_p3 = scmp.lt.u32.totalorder %s764_s29, %s884_s0 }
  0x1e   : > { %p520_p6 = pnand %p519_p5, %p518_p4  ;;  %p524_p10 = scmp.lt.u32.totalorder %s522_s9, %s517_s7 }
  0x1f   : > { %p526_p13 = scmp.lt.u32.totalorder %s517_s7, %s764_s29 }
  0x20   : > { %p521_p7 = pneg %p520_p6  ;;  %p525_p11 = por %p524_p10, %p523_p3 }
  0x22   : > { %p527_p1 = por %p526_p13, %p525_p11 }
  0x24   : > { %p528_p2 = pnand %p527_p1, %p521_p7 }
  0x26   : > { %531 = shalt.err (!%p528_p2)
}
  0x27   : > { %s532_s5 = scalar_lea.vmem %s759_s11, 128  ;;  %s647_s21 = smov [#allocation2]  }
  0x28   : > { %p533_p4 = scmp.ne.s32.totalorder %s759_s11, %s532_s5  ;;  %s537_s25 = sshll.u32 %s647_s21, 4  ;;  %s538_s25 = int_to_ptr.vmem [resolvable:$false] %s537_s25 }
  0x29   : > { %s539_s26 = scalar_lea.vmem %s538_s25, 256  ;;  %p540_p9 = scmp.lt.s32.totalorder %s759_s11, %s538_s25 }
  0x2a   : > { %p535_p6 = pnand %p533_p4, %p519_p5  ;;  %p541_p3 = scmp.lt.s32.totalorder %s539_s26, %s532_s5 }
  0x2c   : > { %p536_p12 = pneg %p535_p6  ;;  %p542_p10 = por %p541_p3, %p540_p9 }
  0x2e   : > { %p543_p11 = pnand %p542_p10, %p536_p12 }
  0x30   : > { %546 = shalt.err (!%p543_p11)
}
  0x31   : > { %427 = dma.hbm_to_vmem [thread:$0]  (!%p768_p0), %s764_s29, 128, %s759_s11, %s154_s30  }
  0x32   : > { %p894_p1 = scmp.lt.s32.totalorder %s645_s19, 9  ;;  %p895_p2 = scmp.ge.s32.totalorder %s645_s19, 1 }
  0x34   : > { %p172_p5 = pnand %p895_p2, %p894_p1 }
  0x35   : > { %s804_s7 = sand.u32 (!%p172_p5), 1, %s621_s13  }
  0x36   : > { %175 = sbr.rel (%p172_p5) target bundleno = 232 (0xe8), region = 32  ;;  %s413_s8 = sshll.u32 (!%p172_p5), %s804_s7, 3 }
  0x37   : > { %s178_s9 = scalar_lea.sflag (!%p172_p5), [#allocation3], %s804_s7  ;;  %s810_s24 = scalar_lea.vmem (!%p172_p5), [#allocation2], %s413_s8 }
  0x3d   : > { %608 = dma.done.wait (%p738_p8), %s178_s9, 128  }
  0x3e   : > { %610 = vsyncadd (%p738_p8), %s178_s9, 4294967168  ;;  %v648_v0 = vmov 2   ;;  %v649_v1 = vmov 0   ;;  %v216_v2 = vld [vmem:[%s885_s1] sm:$0xff]  ;;  %v650_v3 = vmov 3   ;;  %v651_v4 = vmov 1  }
  0x3f   : > { %508 = vset.pattern.permute.xlu1 %v648_v0  ;;  %506 = vset.pattern.permute.xlu0 %v649_v1  ;;  %v652_v5 = vmov 4   ;;  %v653_v6 = vmov 5   ;;  %v215_v7 = vld [vmem:[%s886_s2] sm:$0xff]  ;;  %v654_v8 = vmov 6   ;;  %v655_v9 = vmov 7   ;;  %s416_s10 = sshll.u32 %s633_s16, 2 }
  0x40   : > { %238 = vperm.xlu1 %508, %v216_v2   ;;  %219 = vperm.xlu0 %506, %v216_v2   ;;  %v204_v10 = vld [vmem:[%s810_s24] sm:$0xff]  ;;  %v222_v19 = vlaneseq  ;;  %s316_s20 = sadd.s32 %s629_s15, %s416_s10  ;;  %s203_s21 = scalar_lea.vmem [#allocation5], %s413_s8 }
  0x41   : > { %v205_v11 = vmul.f32 %v204_v10, %v204_v10  ;;  %s417_s5 = sshll.u32 %s316_s20, 7  ;;  %s320_s25 = sshll.u32 %s203_s21, 4  ;;  %s832_s25 = int_to_ptr.vmem [resolvable:$true] %s320_s25 }
  0x42   : > { %v223_v20 = vshrl.u32 %v222_v19, 7  ;;  %s830_s16 = scalar_lea.hbm %s887_s3, %s417_s5  ;;  %s305_s15 = scalar_lea.sflag [#allocation4], %s804_s7 }
  0x43   : > { %v206_v12 = vrot.slane %v205_v11, 4  ;;  %s547_s24 = scalar_lea.vmem %s832_s25, 128  ;;  %p896_p9 = scmp.ne.s32.totalorder %s891_s28, 0 }
  0x44   : > { %509 = vset.pattern.permute.xlu1 %v650_v3  ;;  %507 = vset.pattern.permute.xlu0 %v651_v4  ;;  %v224_v22 = vsub.s32 0, %v223_v20  ;;  %v233_v23 = vsub.s32 1, %v223_v20  ;;  %v243_v24 = vsub.s32 2, %v223_v20  ;;  %v253_v29 = vsub.s32 3, %v223_v20  ;;  %p548_p8 = scmp.ne.s32.totalorder %s832_s25, %s547_s24  ;;  %s656_s8 = smov [#allocation5]  }
  0x45   : > { %248 = vperm.xlu1 %509, %v216_v2   ;;  %228 = vperm.xlu0 %507, %v216_v2   ;;  %v207_v13 = vadd.f32 %v206_v12, %v205_v11  ;;  %v263_v31 = vsub.s32 4, %v223_v20  ;;  %v273_v35 = vsub.s32 5, %v223_v20  ;;  %v283_v43 = vsub.s32 6, %v223_v20  ;;  %s551_s11 = sshll.u32 %s656_s8, 4  ;;  %s552_s11 = int_to_ptr.vmem [resolvable:$false] %s551_s11 }
  0x46   : > { %v293_v52 = vsub.s32 7, %v223_v20  ;;  %p549_p12 = pnand %p548_p8, %p896_p9  ;;  %s553_s29 = scalar_lea.vmem %s552_s11, 256 }
  0x47   : > { %v208_v14 = vrot.slane %v207_v13, 2  ;;  %p554_p7 = scmp.lt.s32.totalorder %s832_s25, %s552_s11  ;;  %p555_p13 = scmp.lt.s32.totalorder %s553_s29, %s547_s24 }
  0x48   : > { %p550_p0 = pneg %p549_p12 }
  0x49   : > { %510 = vset.pattern.permute.xlu1 %v652_v5  ;;  %511 = vset.pattern.permute.xlu0 %v653_v6  ;;  %v209_v15 = vadd.f32 %v208_v14, %v207_v13  ;;  %p556_p4 = por %p555_p13, %p554_p7 }
  0x4a   : > { %258 = vperm.xlu1 %510, %v216_v2   ;;  %268 = vperm.xlu0 %511, %v216_v2  }
  0x4b   : > { %v210_v16 = vrot.slane %v209_v15, 1  ;;  %p557_p6 = pnand %p556_p4, %p550_p0 }
  0x4d   : > { %v211_v17 = vadd.f32 %v210_v16, %v209_v15 }
  0x4e   : > { %512 = vset.pattern.permute.xlu1 %v654_v8  ;;  %514 = vset.pattern.permute.xlu0 %v649_v1 }
  0x4f   : > { %278 = vperm.xlu1 %512, %v216_v2   ;;  %299 = vperm.xlu0 %514, %v215_v7   ;;  %v212_v18 = vmax.f32 %v211_v17, 1e-24 }
  0x51   : > { %515 = vrsqrt.f32 %v212_v18 }
  0x53   : > { %513 = vset.pattern.permute.xlu1 %v655_v9 }
  0x54   : > { %288 = vperm.xlu1 %513, %v216_v2  }
  0x5b   : > { %v516_v21 = vpop.eup %515 }
  0x5c   : > { %v214_v26 = vmul.f32 %v516_v21, %v204_v10 }
  0x5e   : > { %v225_v28 = vrot.slane %v214_v26, %v224_v22  ;;  %v234_v30 = vrot.slane %v214_v26, %v233_v23  ;;  %v244_v32 = vrot.slane %v214_v26, %v243_v24  ;;  %v254_v37 = vrot.slane %v214_v26, %v253_v29 }
  0x5f   : > { %v264_v39 = vrot.slane %v214_v26, %v263_v31  ;;  %v274_v42 = vrot.slane %v214_v26, %v273_v35  ;;  %v284_v51 = vrot.slane %v214_v26, %v283_v43  ;;  %v294_v57 = vrot.slane %v214_v26, %v293_v52 }
  0xbf   : > { %v239_v25 = vpop.permute.xlu1 %238  ;;  %v220_v27 = vpop.permute.xlu0 %219 }
  0xc0   : > { %v226_v36 = vmul.f32 %v225_v28, %v220_v27  ;;  %v245_v40 = vmul.f32 %v244_v32, %v239_v25 }
  0xc4   : > { %v249_v33 = vpop.permute.xlu1 %248  ;;  %v229_v34 = vpop.permute.xlu0 %228 }
  0xc5   : > { %v235_v38 = vmul.f32 %v234_v30, %v229_v34  ;;  %v255_v44 = vmul.f32 %v254_v37, %v249_v33 }
  0xc7   : > { %v236_v41 = vadd.f32 %v235_v38, %v226_v36 }
  0xc9   : > { %v246_v45 = vadd.f32 %v245_v40, %v236_v41  ;;  %v259_v46 = vpop.permute.xlu1 %258  ;;  %v269_v47 = vpop.permute.xlu0 %268 }
  0xca   : > { %v265_v48 = vmul.f32 %v264_v39, %v259_v46  ;;  %v275_v50 = vmul.f32 %v274_v42, %v269_v47 }
  0xcb   : > { %v256_v49 = vadd.f32 %v255_v44, %v246_v45 }
  0xcd   : > { %v266_v53 = vadd.f32 %v265_v48, %v256_v49 }
  0xce   : > { %v279_v54 = vpop.permute.xlu1 %278  ;;  %v300_v61 = vpop.permute.xlu0 %299 }
  0xcf   : > { %v276_v55 = vadd.f32 %v275_v50, %v266_v53  ;;  %v285_v56 = vmul.f32 %v284_v51, %v279_v54 }
  0xd1   : > { %v286_v59 = vadd.f32 %v285_v56, %v276_v55 }
  0xd3   : > { %v289_v58 = vpop.permute.xlu1 %288 }
  0xd4   : > { %v295_v60 = vmul.f32 %v294_v57, %v289_v58 }
  0xd6   : > { %v296_v62 = vadd.f32 %v295_v60, %v286_v59 }
  0xd8   : > { %v302_v63 = vadd.f32 %v300_v61, %v296_v62 }
  0xda   : > { %303 = vst [vmem:[%s203_s21] sm:$0xff] %v302_v63 }
  0xdb   : > { %560 = shalt.err (!%p557_p6)
}
  0xdc   : > { %s561_s7 = scalar_lea.hbm %s830_s16, 128  ;;  %s565_s10 = scalar_lea.hbm %s887_s3, 1024 }
  0xdd   : > { %p562_p3 = scmp.ne.s32.totalorder %s830_s16, %s561_s7  ;;  %p566_p1 = scmp.lt.u32.totalorder %s830_s16, %s887_s3 }
  0xde   : > { %p567_p2 = scmp.lt.u32.totalorder %s565_s10, %s561_s7  ;;  %p569_p8 = scmp.lt.u32.totalorder %s561_s7, %s830_s16 }
  0xdf   : > { %p563_p10 = pnand %p562_p3, %p896_p9 }
  0xe0   : > { %p568_p5 = por %p567_p2, %p566_p1 }
  0xe1   : > { %p564_p11 = pneg %p563_p10 }
  0xe2   : > { %p570_p12 = por %p569_p8, %p568_p5 }
  0xe4   : > { %p571_p0 = pnand %p570_p12, %p564_p11 }
  0xe6   : > { %574 = shalt.err (!%p571_p0)
}
  0xe7   : > { %422 = dma.vmem_to_hbm [thread:$0]  (%p896_p9), %s832_s25, 128, %s830_s16, %s305_s15  }
  0xe8 PF: > { %p433_p7 = scmp.ge.s32.totalorder %s645_s19, 2  ;;  %s332_s21 = sand.u32 1, %s617_s12  }
  0xe9   : > { %p897_p13 = scmp.ne.s32.totalorder %s892_s4, 0  ;;  %s333_s26 = scalar_lea.sflag [#allocation4], %s332_s21 }
  0xeb   : > { %p429_p4 = pnand %p433_p7, %p897_p13 }
  0xed   : > { %612 = dma.done.wait (!%p429_p4), %s333_s26, 128  }
  0xee   : > { %614 = vsyncadd (!%p429_p4), %s333_s26, 4294967168  ;;  %s19_s19 = sadd.s32 1, %s645_s19   ;;  %s898_s12 = smov %s621_s13 }
  0xef   : > { %p16_p6 = scmp.ge.s32.totalorder %s19_s19, 10   ;;  %s899_s13 = smov %s625_s14 }
  0xf0   : > { %s900_s14 = smov %s755_s6  ;;  %s901_s15 = smov %s637_s17 }
  0xf1   : > { %s902_s16 = smov %s641_s18  ;;  %s903_s17 = smov %s906_s22 }
  0xf2   : > { %s904_s18 = smov %s910_s23  ;;  %18 = sbr.rel (!%p16_p6) target bundleno = 7 (0x7), region = 77 }
  0xf9   :  { %338 = vsyncpa [#allocation3], 1 }
  0xfa   :  { %340 = vsyncpa [#allocation3 + $0x1], 1 }
  0xfb   :  { %341 = vsyncpa [#allocation4], 1 }
  0xfc   :  { %343 = vsyncpa [#allocation4 + $0x1], 1 }

</bundles_post_ra>
